<compile_context>
chip_gen: v7x
topology: tpu7x:2x2x1
jax: 0.10.0
libtpu: 0.0.40
codegen_flags: <defaults>
</compile_context>

<pallas_src>
import functools

import jax
import jax.numpy as jnp
from jax import lax
from jax.experimental import pallas as pl
from jax.experimental.pallas import tpu as pltpu


def _round_up(a, b):
    return (a + b - 1) // b * b


def _ff_kernel(x_ref, seg_ref, g_ref, bt_ref, w1_ref, b1_ref, w2_ref, b2_ref,
               o_ref, *, inv_d):
    # x_ref: (tm_p, P*D) bf16 -- P logical rows packed per 128-lane row.
    x = x_ref[...].astype(jnp.float32)
    seg = seg_ref[...]                      # (P*D, P*D) f32 block indicator

    # Segmented LayerNorm per D-lane group (torch semantics: biased variance,
    # eps=1e-5).  Segment sums via MXU matmul with the indicator matrix.
    mean = jnp.dot(x, seg, preferred_element_type=jnp.float32) * inv_d
    xc = x - mean
    var = jnp.dot(xc * xc, seg, preferred_element_type=jnp.float32) * inv_d
    xn = xc * lax.rsqrt(var + 1e-5)
    xn = xn * g_ref[...] + bt_ref[...]

    # Linear 1 (block-diagonal packed weights, bf16 operands, f32 accumulation).
    h = jnp.dot(xn.astype(jnp.bfloat16), w1_ref[...],
                preferred_element_type=jnp.float32) + b1_ref[...]

    # Exact GELU (torch default): 0.5 * h * (1 + erf(h / sqrt(2))), in f32.
    h = 0.5 * h * (1.0 + lax.erf(h * 0.7071067811865476))

    # Linear 2 (block-diagonal packed weights, bf16 operands, f32 accumulation).
    y = jnp.dot(h.astype(jnp.bfloat16), w2_ref[...],
                preferred_element_type=jnp.float32) + b2_ref[...]

    # Dropout(p=0.0) is identity -> nothing to do.
    o_ref[...] = y.astype(o_ref.dtype)


def feed_forward(x, gamma, beta, w1, b1, w2, b2, *, target_rows_packed=2048):
    """x: (B, N, D).  w1: (D, H), w2: (H, D).  Returns (B, N, D) bf16."""
    B, N, D = x.shape
    H = w1.shape[1]
    M = B * N

    # Lane-packing factor: P logical rows of width D per 128-lane vreg row.
    P = 128 // D if (D <= 128 and 128 % D == 0) else 1
    PD, PH = P * D, P * H

    # Logical rows padded to a multiple of P, then packed.
    M_log = _round_up(M, P)
    Mp0 = M_log // P

    # Row tiling in packed space: one big block when it fits (no forced split
    # on single-TC chips); otherwise even #blocks for v7x's two TensorCores.
    nblk = pl.cdiv(Mp0, target_rows_packed)
    if nblk > 1 and nblk % 2 == 1:
        nblk += 1
    tm_p = Mp0 if nblk == 1 else _round_up(pl.cdiv(Mp0, nblk), 16)
    Mp = tm_p * nblk

    x2 = x.reshape(M, D)
    if M_log != M:
        x2 = jnp.pad(x2, ((0, M_log - M), (0, 0)))
    xp = x2.astype(jnp.bfloat16).reshape(Mp0, PD)   # bf16 streamed input
    if Mp != Mp0:
        xp = jnp.pad(xp, ((0, Mp - Mp0), (0, 0)))

    # Packed parameters (built once; tiny).
    eye_p = jnp.eye(P, dtype=jnp.float32)
    seg = jnp.kron(eye_p, jnp.ones((D, D), jnp.float32))           # (PD, PD)
    w1bd = jnp.kron(eye_p, w1.astype(jnp.float32)).astype(jnp.bfloat16)  # (PD, PH)
    w2bd = jnp.kron(eye_p, w2.astype(jnp.float32)).astype(jnp.bfloat16)  # (PH, PD)
    gamma_t = jnp.tile(gamma.astype(jnp.float32), P).reshape(1, PD)
    beta_t = jnp.tile(beta.astype(jnp.float32), P).reshape(1, PD)
    b1_t = jnp.tile(b1.astype(jnp.float32), P).reshape(1, PH)
    b2_t = jnp.tile(b2.astype(jnp.float32), P).reshape(1, PD)

    row_spec = pl.BlockSpec((tm_p, PD), lambda i: (i, 0))
    seg_spec = pl.BlockSpec((PD, PD), lambda i: (0, 0))
    w1_spec = pl.BlockSpec((PD, PH), lambda i: (0, 0))
    w2_spec = pl.BlockSpec((PH, PD), lambda i: (0, 0))
    vd_spec = pl.BlockSpec((1, PD), lambda i: (0, 0))
    vh_spec = pl.BlockSpec((1, PH), lambda i: (0, 0))

    cost = pl.CostEstimate(
        flops=int(Mp) * (4 * PD * PD + 4 * PD * PH),        # 2 LN-sum + 2 linear matmuls
        transcendentals=int(Mp) * (PH + PD),                 # erf + rsqrt
        bytes_accessed=2 * Mp * PD * 2                       # x in + y out (bf16)
                       + 2 * PD * PH * 2                     # bf16 block-diag weights
                       + PD * PD * 4                         # segment-indicator matrix
                       + (3 * PD + PH) * 4,                  # biases + LN affine (f32)
    )

    out_p = pl.pallas_call(
        functools.partial(_ff_kernel, inv_d=1.0 / D),
        out_shape=jax.ShapeDtypeStruct((Mp, PD), jnp.bfloat16),
        grid_spec=pltpu.PrefetchScalarGridSpec(
            num_scalar_prefetch=0,
            grid=(nblk,),
            in_specs=[row_spec, seg_spec, vd_spec, vd_spec, w1_spec, vh_spec,
                      w2_spec, vd_spec],
            out_specs=row_spec,
        ),
        compiler_params=pltpu.CompilerParams(
            dimension_semantics=("parallel",)),
        cost_estimate=cost,
    )(xp, seg, gamma_t, beta_t, w1bd, b1_t, w2bd, b2_t)

    # Unpack; slices/reshapes are no-ops when shapes divide evenly.
    return out_p[:Mp0].reshape(M_log, D)[:M].reshape(B, N, D)


def _reference(x2, gamma, beta, w1, b1, w2, b2):
    mu = jnp.mean(x2, axis=-1, keepdims=True)
    var = jnp.mean((x2 - mu) ** 2, axis=-1, keepdims=True)
    xn = (x2 - mu) / jnp.sqrt(var + 1e-5) * gamma + beta
    h = xn @ w1 + b1
    g = 0.5 * h * (1.0 + lax.erf(h / jnp.sqrt(2.0)))
    return g @ w2 + b2


if __name__ == "__main__":
    B, N, D, H = 2, 8, 32, 64   # batch, tokens, dim, hidden_dim
    key = jax.random.PRNGKey(0)
    kx, kg, kb, k1, k2, k3, k4 = jax.random.split(key, 7)

    x = jax.random.normal(kx, (B, N, D), dtype=jnp.float32)

    # Deterministic synthetic parameters mirroring the nn.Module shapes.
    gamma = 1.0 + 0.05 * jax.random.normal(kg, (D,), dtype=jnp.float32)
    beta = 0.05 * jax.random.normal(kb, (D,), dtype=jnp.float32)
    w1 = jax.random.normal(k1, (D, H), dtype=jnp.float32) / jnp.sqrt(jnp.float32(D))
    b1 = 0.1 * jax.random.normal(k2, (H,), dtype=jnp.float32)
    w2 = jax.random.normal(k3, (H, D), dtype=jnp.float32) / jnp.sqrt(jnp.float32(H))
    b2 = 0.1 * jax.random.normal(k4, (D,), dtype=jnp.float32)

    y = feed_forward(x, gamma, beta, w1, b1, w2, b2)
    y = jax.block_until_ready(y)

    # Reference in f32 using bf16-rounded streamed input and weights (the
    # kernel streams x/y in bf16 and feeds the MXU bf16 operands); the
    # tolerance absorbs the bf16 activation/output rounding.
    xb = x.astype(jnp.bfloat16).astype(jnp.float32).reshape(B * N, D)
    w1b = w1.astype(jnp.bfloat16).astype(jnp.float32)
    w2b = w2.astype(jnp.bfloat16).astype(jnp.float32)
    y_ref = _reference(xb, gamma, beta, w1b, b1, w2b, b2).reshape(B, N, D)

    assert jnp.allclose(y.astype(jnp.float32), y_ref, rtol=3e-2, atol=3e-2), \
        "mismatch vs reference"
    print("KERNEL_OK")
</pallas_src>

<mosaic_0001>
module attributes {stable_mosaic.version = 11 : i64} {
  func.func @_ff_kernel(%arg0: i32, %arg1: memref<4x128xbf16, #tpu.memory_space<vmem>>, %arg2: memref<128x128xf32, #tpu.memory_space<vmem>>, %arg3: memref<1x128xf32, #tpu.memory_space<vmem>>, %arg4: memref<1x128xf32, #tpu.memory_space<vmem>>, %arg5: memref<128x256xbf16, #tpu.memory_space<vmem>>, %arg6: memref<1x256xf32, #tpu.memory_space<vmem>>, %arg7: memref<256x128xbf16, #tpu.memory_space<vmem>>, %arg8: memref<1x128xf32, #tpu.memory_space<vmem>>, %arg9: memref<4x128xbf16, #tpu.memory_space<vmem>>) attributes {dimension_semantics = [#tpu.dimension_semantics<parallel>], iteration_bounds = array<i64: 1>, scalar_prefetch = 0 : i64, scratch_operands = 0 : i64, tpu.core_type = #tpu.core_type<tc>, window_params = [{transform_indices = @transform_0, window_bounds = array<i64: 4, 128>}, {pipeline_mode = #tpu.pipeline_mode<synchronous>, transform_indices = @transform_1, window_bounds = array<i64: 128, 128>}, {pipeline_mode = #tpu.pipeline_mode<synchronous>, transform_indices = @transform_2, window_bounds = array<i64: 1, 128>}, {pipeline_mode = #tpu.pipeline_mode<synchronous>, transform_indices = @transform_3, window_bounds = array<i64: 1, 128>}, {pipeline_mode = #tpu.pipeline_mode<synchronous>, transform_indices = @transform_4, window_bounds = array<i64: 128, 256>}, {pipeline_mode = #tpu.pipeline_mode<synchronous>, transform_indices = @transform_5, window_bounds = array<i64: 1, 256>}, {pipeline_mode = #tpu.pipeline_mode<synchronous>, transform_indices = @transform_6, window_bounds = array<i64: 256, 128>}, {pipeline_mode = #tpu.pipeline_mode<synchronous>, transform_indices = @transform_7, window_bounds = array<i64: 1, 128>}, {transform_indices = @transform_8, window_bounds = array<i64: 4, 128>}]} {
    %c0 = arith.constant 0 : index
    %c0_0 = arith.constant 0 : index
    %0 = vector.load %arg1[%c0, %c0_0] : memref<4x128xbf16, #tpu.memory_space<vmem>>, vector<4x128xbf16>
    %1 = arith.extf %0 : vector<4x128xbf16> to vector<4x128xf32>
    %c0_1 = arith.constant 0 : index
    %c0_2 = arith.constant 0 : index
    %2 = vector.load %arg2[%c0_1, %c0_2] : memref<128x128xf32, #tpu.memory_space<vmem>>, vector<128x128xf32>
    %cst = arith.constant dense<0.000000e+00> : vector<4x128xf32>
    %3 = tpu.matmul %1, %2, %cst {dimension_numbers = #tpu.dot_dimension_numbers<[1], [0], [0], [1], [0, 0, 1, 1], [], []>} : vector<4x128xf32>, vector<128x128xf32>, vector<4x128xf32> -> vector<4x128xf32>
    %cst_3 = arith.constant 3.125000e-02 : f32
    %4 = vector.broadcast %cst_3 : f32 to vector<4x128xf32>
    %5 = arith.mulf %3, %4 : vector<4x128xf32>
    %6 = arith.subf %1, %5 : vector<4x128xf32>
    %7 = arith.mulf %6, %6 : vector<4x128xf32>
    %cst_4 = arith.constant dense<0.000000e+00> : vector<4x128xf32>
    %8 = tpu.matmul %7, %2, %cst_4 {dimension_numbers = #tpu.dot_dimension_numbers<[1], [0], [0], [1], [0, 0, 1, 1], [], []>} : vector<4x128xf32>, vector<128x128xf32>, vector<4x128xf32> -> vector<4x128xf32>
    %cst_5 = arith.constant 3.125000e-02 : f32
    %9 = vector.broadcast %cst_5 : f32 to vector<4x128xf32>
    %10 = arith.mulf %8, %9 : vector<4x128xf32>
    %cst_6 = arith.constant 9.99999974E-6 : f32
    %11 = vector.broadcast %cst_6 : f32 to vector<4x128xf32>
    %12 = arith.addf %10, %11 : vector<4x128xf32>
    %13 = math.rsqrt %12 : vector<4x128xf32>
    %14 = arith.mulf %6, %13 : vector<4x128xf32>
    %c0_7 = arith.constant 0 : index
    %c0_8 = arith.constant 0 : index
    %15 = vector.load %arg3[%c0_7, %c0_8] : memref<1x128xf32, #tpu.memory_space<vmem>>, vector<1x128xf32>
    %16 = vector.broadcast %15 : vector<1x128xf32> to vector<4x128xf32>
    %17 = arith.mulf %14, %16 : vector<4x128xf32>
    %c0_9 = arith.constant 0 : index
    %c0_10 = arith.constant 0 : index
    %18 = vector.load %arg4[%c0_9, %c0_10] : memref<1x128xf32, #tpu.memory_space<vmem>>, vector<1x128xf32>
    %19 = vector.broadcast %18 : vector<1x128xf32> to vector<4x128xf32>
    %20 = arith.addf %17, %19 : vector<4x128xf32>
    %21 = arith.truncf %20 : vector<4x128xf32> to vector<4x128xbf16>
    %c0_11 = arith.constant 0 : index
    %c0_12 = arith.constant 0 : index
    %22 = vector.load %arg5[%c0_11, %c0_12] : memref<128x256xbf16, #tpu.memory_space<vmem>>, vector<128x256xbf16>
    %cst_13 = arith.constant dense<0.000000e+00> : vector<4x256xf32>
    %23 = tpu.matmul %21, %22, %cst_13 {dimension_numbers = #tpu.dot_dimension_numbers<[1], [0], [0], [1], [0, 0, 1, 1], [], []>} : vector<4x128xbf16>, vector<128x256xbf16>, vector<4x256xf32> -> vector<4x256xf32>
    %c0_14 = arith.constant 0 : index
    %c0_15 = arith.constant 0 : index
    %24 = vector.load %arg6[%c0_14, %c0_15] : memref<1x256xf32, #tpu.memory_space<vmem>>, vector<1x256xf32>
    %25 = vector.broadcast %24 : vector<1x256xf32> to vector<4x256xf32>
    %26 = arith.addf %23, %25 : vector<4x256xf32>
    %cst_16 = arith.constant 5.000000e-01 : f32
    %27 = vector.broadcast %cst_16 : f32 to vector<4x256xf32>
    %28 = arith.mulf %27, %26 : vector<4x256xf32>
    %cst_17 = arith.constant 0.707106769 : f32
    %29 = vector.broadcast %cst_17 : f32 to vector<4x256xf32>
    %30 = arith.mulf %26, %29 : vector<4x256xf32>
    %31 = math.erf %30 : vector<4x256xf32>
    %cst_18 = arith.constant 1.000000e+00 : f32
    %32 = vector.broadcast %cst_18 : f32 to vector<4x256xf32>
    %33 = arith.addf %32, %31 : vector<4x256xf32>
    %34 = arith.mulf %28, %33 : vector<4x256xf32>
    %35 = arith.truncf %34 : vector<4x256xf32> to vector<4x256xbf16>
    %c0_19 = arith.constant 0 : index
    %c0_20 = arith.constant 0 : index
    %36 = vector.load %arg7[%c0_19, %c0_20] : memref<256x128xbf16, #tpu.memory_space<vmem>>, vector<256x128xbf16>
    %cst_21 = arith.constant dense<0.000000e+00> : vector<4x128xf32>
    %37 = tpu.matmul %35, %36, %cst_21 {dimension_numbers = #tpu.dot_dimension_numbers<[1], [0], [0], [1], [0, 0, 1, 1], [], []>} : vector<4x256xbf16>, vector<256x128xbf16>, vector<4x128xf32> -> vector<4x128xf32>
    %c0_22 = arith.constant 0 : index
    %c0_23 = arith.constant 0 : index
    %38 = vector.load %arg8[%c0_22, %c0_23] : memref<1x128xf32, #tpu.memory_space<vmem>>, vector<1x128xf32>
    %39 = vector.broadcast %38 : vector<1x128xf32> to vector<4x128xf32>
    %40 = arith.addf %37, %39 : vector<4x128xf32>
    %41 = arith.truncf %40 : vector<4x128xf32> to vector<4x128xbf16>
    %c0_24 = arith.constant 0 : index
    %c0_25 = arith.constant 0 : index
    %42 = vector.load %arg9[%c0_24, %c0_25] : memref<4x128xbf16, #tpu.memory_space<vmem>>, vector<4x128xbf16>
    tpu.vector_store %arg9[%c0_24, %c0_25], %41 {strides = array<i32>} : memref<4x128xbf16, #tpu.memory_space<vmem>>, vector<4x128xbf16>,
    return
  }
  func.func @transform_0(%arg0: i32) -> (i32, i32) {
    %c0_i32 = arith.constant 0 : i32
    %c0_i32_0 = arith.constant 0 : i32
    return %arg0, %c0_i32 : i32, i32
  }
  func.func @transform_1(%arg0: i32) -> (i32, i32) {
    %c0_i32 = arith.constant 0 : i32
    %c0_i32_0 = arith.constant 0 : i32
    %c0_i32_1 = arith.constant 0 : i32
    return %c0_i32, %c0_i32_0 : i32, i32
  }
  func.func @transform_2(%arg0: i32) -> (i32, i32) {
    %c0_i32 = arith.constant 0 : i32
    %c0_i32_0 = arith.constant 0 : i32
    %c0_i32_1 = arith.constant 0 : i32
    return %c0_i32, %c0_i32_0 : i32, i32
  }
  func.func @transform_3(%arg0: i32) -> (i32, i32) {
    %c0_i32 = arith.constant 0 : i32
    %c0_i32_0 = arith.constant 0 : i32
    %c0_i32_1 = arith.constant 0 : i32
    return %c0_i32, %c0_i32_0 : i32, i32
  }
  func.func @transform_4(%arg0: i32) -> (i32, i32) {
    %c0_i32 = arith.constant 0 : i32
    %c0_i32_0 = arith.constant 0 : i32
    %c0_i32_1 = arith.constant 0 : i32
    return %c0_i32, %c0_i32_0 : i32, i32
  }
  func.func @transform_5(%arg0: i32) -> (i32, i32) {
    %c0_i32 = arith.constant 0 : i32
    %c0_i32_0 = arith.constant 0 : i32
    %c0_i32_1 = arith.constant 0 : i32
    return %c0_i32, %c0_i32_0 : i32, i32
  }
  func.func @transform_6(%arg0: i32) -> (i32, i32) {
    %c0_i32 = arith.constant 0 : i32
    %c0_i32_0 = arith.constant 0 : i32
    %c0_i32_1 = arith.constant 0 : i32
    return %c0_i32, %c0_i32_0 : i32, i32
  }
  func.func @transform_7(%arg0: i32) -> (i32, i32) {
    %c0_i32 = arith.constant 0 : i32
    %c0_i32_0 = arith.constant 0 : i32
    %c0_i32_1 = arith.constant 0 : i32
    return %c0_i32, %c0_i32_0 : i32, i32
  }
  func.func @transform_8(%arg0: i32) -> (i32, i32) {
    %c0_i32 = arith.constant 0 : i32
    %c0_i32_0 = arith.constant 0 : i32
    return %arg0, %c0_i32 : i32, i32
  }
}

</mosaic_0001>

<bundles_post_ra>
// kernel: tpu_custom_call.1
= control target key start
LH: loop header
LB: loop body
LE: loop exit
PB: predicated region body
PF: predicated region fallthrough
CT: control target
= control target key end

     0   :  { %13 = vsyncpa [#allocation3], 0  ;;  %s1143_s0 = inlined_call_operand.hbm [shape: bf16[4,128], index: 0, kind: input, shape index: {}]   ;;  %s1144_s1 = inlined_call_operand.hbm [shape: f32[128,128], index: 1, kind: input, shape index: {}]   ;;  %s1145_s2 = inlined_call_operand.vmem [shape: f32[1,128], index: 2, kind: input, shape index: {}]   ;;  %s1146_s3 = inlined_call_operand.vmem [shape: f32[1,128], index: 3, kind: input, shape index: {}]   ;;  %s1147_s4 = inlined_call_operand.hbm [shape: bf16[128,256], index: 4, kind: input, shape index: {}]   ;;  %s1148_s5 = inlined_call_operand.vmem [shape: f32[1,256], index: 5, kind: input, shape index: {}]   ;;  %s1149_s6 = inlined_call_operand.hbm [shape: bf16[256,128], index: 6, kind: input, shape index: {}]   ;;  %s1150_s7 = inlined_call_operand.vmem [shape: f32[1,128], index: 7, kind: input, shape index: {}]   ;;  %s1151_s8 = inlined_call_operand.hbm [shape: bf16[4,128], index: 8, kind: output, shape index: {}]  }
   0x1   :  { %14 = vsyncpa [#allocation6], 0 }
   0x2   :  { %15 = vsyncpa [#allocation9], 0 }
   0x3   :  { %16 = vsyncpa [#allocation4], 0  ;;  %s1007_s27 = smov [#allocation5]   ;;  %s889_s9 = scalar_lea.hbm %s1144_s1, 2048 }
   0x4   :  { %s32_s28 = sshll.u32 %s1007_s27, 4  ;;  %p890_p0 = scmp.ne.s32.totalorder %s1144_s1, %s889_s9  ;;  %s33_s28 = int_to_ptr.vmem [resolvable:$true] %s32_s28 }
   0x5   :  { %p893_p1 = scmp.lt.u32.totalorder %s889_s9, %s1144_s1 }
   0x7   :  { %p895_p2 = pnand %p893_p1, %p890_p0 }
   0x9   :  { %898 = shalt.err (!%p895_p2)
}
   0xa   :  { %s899_s14 = scalar_lea.vmem %s33_s28, 2048  ;;  %p904_p4 = scmp.lt.s32.totalorder %s33_s28, %s33_s28 }
   0xb   :  { %p900_p3 = scmp.ne.s32.totalorder %s33_s28, %s899_s14  ;;  %p905_p5 = scmp.lt.s32.totalorder %s899_s14, %s899_s14 }
   0xd   :  { %p906_p6 = por %p905_p5, %p904_p4 }
   0xf   :  { %p907_p7 = pnand %p906_p6, %p900_p3 }
  0x11   :  { %910 = shalt.err (!%p907_p7)
}
  0x12   :  { %s1008_s15 = smov 128   ;;  %s1009_s16 = smov 8  }
  0x13   :  { %38 = dma.hbm_to_vmem [thread:$0]  %s1144_s1, 2048, %s33_s28, [#allocation6], %s1008_s15, %s1008_s15, %s1009_s16  }
  0x14   :  { %s1010_s19 = smov [#allocation2]   ;;  %s1011_s21 = smov [#allocation7]  }
  0x15   :  { %s23_s20 = sshll.u32 %s1010_s19, 4  ;;  %s48_s22 = sshll.u32 %s1011_s21, 4  ;;  %s24_s20 = int_to_ptr.vmem [resolvable:$true] %s23_s20  ;;  %s49_s22 = int_to_ptr.vmem [resolvable:$true] %s48_s22 }
  0x16   :  { %s911_s25 = scalar_lea.hbm %s1143_s0, 32 }
  0x17   :  { %p912_p8 = scmp.ne.s32.totalorder %s1143_s0, %s911_s25  ;;  %p915_p9 = scmp.lt.u32.totalorder %s911_s25, %s1143_s0 }
  0x19   :  { %p917_p10 = pnand %p915_p9, %p912_p8 }
  0x1b   :  { %920 = shalt.err (!%p917_p10)
}
  0x1c   :  { %s921_s1 = scalar_lea.vmem %s24_s20, 32  ;;  %p926_p12 = scmp.lt.s32.totalorder %s24_s20, %s24_s20 }
  0x1d   :  { %p922_p11 = scmp.ne.s32.totalorder %s24_s20, %s921_s1  ;;  %p927_p13 = scmp.lt.s32.totalorder %s921_s1, %s921_s1 }
  0x1f   :  { %p928_p0 = por %p927_p13, %p926_p12 }
  0x21   :  { %p929_p1 = pnand %p928_p0, %p922_p11 }
  0x23   :  { %932 = shalt.err (!%p929_p1)
}
  0x24   :  { %26 = dma.hbm_to_vmem [thread:$0]  %s1143_s0, 32, %s24_s20, [#allocation3]  }
  0x25   :  { %s933_s12 = scalar_lea.hbm %s1147_s4, 2048 }
  0x26   :  { %p934_p2 = scmp.ne.s32.totalorder %s1147_s4, %s933_s12  ;;  %p937_p3 = scmp.lt.u32.totalorder %s933_s12, %s1147_s4 }
  0x28   :  { %p939_p4 = pnand %p937_p3, %p934_p2 }
  0x2a   :  { %942 = shalt.err (!%p939_p4)
}
  0x2b   :  { %s943_s19 = scalar_lea.vmem %s49_s22, 2048  ;;  %p948_p6 = scmp.lt.s32.totalorder %s49_s22, %s49_s22 }
  0x2c   :  { %p944_p5 = scmp.ne.s32.totalorder %s49_s22, %s943_s19  ;;  %p949_p7 = scmp.lt.s32.totalorder %s943_s19, %s943_s19 }
  0x2e   :  { %p950_p8 = por %p949_p7, %p948_p6 }
  0x30   :  { %p951_p9 = pnand %p950_p8, %p944_p5 }
  0x32   :  { %954 = shalt.err (!%p951_p9)
}
  0x33   :  { %54 = dma.hbm_to_vmem [thread:$0]  %s1147_s4, 2048, %s49_s22, [#allocation6], %s1008_s15, %s1008_s15, %s1009_s16  }
  0x34   :  { %s1012_s21 = smov [#allocation8]   ;;  %s955_s26 = scalar_lea.hbm %s1149_s6, 2048 }
  0x35   :  { %s62_s23 = sshll.u32 %s1012_s21, 4  ;;  %p956_p10 = scmp.ne.s32.totalorder %s1149_s6, %s955_s26  ;;  %s63_s23 = int_to_ptr.vmem [resolvable:$true] %s62_s23 }
  0x36   :  { %p959_p11 = scmp.lt.u32.totalorder %s955_s26, %s1149_s6 }
  0x38   :  { %p961_p12 = pnand %p959_p11, %p956_p10 }
  0x3a   :  { %964 = shalt.err (!%p961_p12)
}
  0x3b   :  { %s965_s28 = scalar_lea.vmem %s63_s23, 2048  ;;  %p970_p0 = scmp.lt.s32.totalorder %s63_s23, %s63_s23 }
  0x3c   :  { %p966_p13 = scmp.ne.s32.totalorder %s63_s23, %s965_s28  ;;  %p971_p1 = scmp.lt.s32.totalorder %s965_s28, %s965_s28 }
  0x3e   :  { %p972_p2 = por %p971_p1, %p970_p0 }
  0x40   :  { %p973_p3 = pnand %p972_p2, %p966_p13 }
  0x42   :  { %976 = shalt.err (!%p973_p3)
}
  0x43   :  { %s1013_s4 = smov 64   ;;  %s1014_s15 = smov 4  }
  0x44   :  { %68 = dma.hbm_to_vmem [thread:$0]  %s1149_s6, 2048, %s63_s23, [#allocation9], %s1013_s4, %s1013_s4, %s1014_s15  }
  0x45   :  { %999 = dma.done.wait [#allocation3], 32  }
  0x46   :  { %1000 = vsyncadd [#allocation3], 4294967264 }
  0x47   :  { %1001 = dma.done.wait [#allocation6], 4096  }
  0x48   :  { %1002 = vsyncadd [#allocation6], 4294963200 }
  0x49   :  { %1003 = dma.done.wait [#allocation9], 2048  }
  0x4a   :  { %1004 = vsyncadd [#allocation9], 4294965248  ;;  %v1015_v0 = vmov 0.0|0.0   ;;  %vm1016_vm0 = vmmov 0   ;;  %v1017_v1 = vmov 0.0   ;;  %v86_v2 = vld [vmem:[#allocation5] sm:$0xff] }
  0x4b   :  { %782 = vmatprep.subr.bf16.mxu0 %v1015_v0  ;;  %744 = vmatprep.mubr.msk.f32.mxu0 %vm1016_vm0, %v1017_v1  ;;  %v87_v3 = vld [vmem:[#allocation5 + $0x8] sm:$0xff]  ;;  %v88_v4 = vld [vmem:[#allocation5 + $0x10] sm:$0xff]  ;;  %v89_v6 = vld [vmem:[#allocation5 + $0x18] sm:$0xff]  ;;  %v1018_v44 = vmov 0   ;;  %s1019_s13 = smov [#allocation10]  }
  0x4c   :  { %806 = vmatprep.subr.bf16.mxu1 %v1015_v0  ;;  %779 = vmatprep.mubr.msk.f32.mxu1 %vm1016_vm0, %v1017_v1  ;;  %v783_v5 = vpack.c.bf16 %v87_v3, %v86_v2  ;;  %v786_v7 = vpack.c.bf16 %v89_v6, %v88_v4  ;;  %v90_v8 = vld [vmem:[#allocation5 + $0x20] sm:$0xff]  ;;  %v91_v9 = vld [vmem:[#allocation5 + $0x28] sm:$0xff]  ;;  %v92_v10 = vld [vmem:[#allocation5 + $0x30] sm:$0xff]  ;;  %s610_s14 = sshll.u32 %s1019_s13, 4  ;;  %s611_s14 = int_to_ptr.vmem [resolvable:$true] %s610_s14 }
  0x4d   :  { %v93_v11 = vld [vmem:[#allocation5 + $0x38] sm:$0xff]  ;;  %v789_v12 = vpack.c.bf16 %v91_v9, %v90_v8  ;;  %v94_v13 = vld [vmem:[#allocation5 + $0x40] sm:$0xff]  ;;  %v95_v14 = vld [vmem:[#allocation5 + $0x48] sm:$0xff]  ;;  %s977_s17 = scalar_lea.vmem %s611_s14, 32  ;;  %p982_p5 = scmp.lt.s32.totalorder %s611_s14, %s611_s14 }
  0x4e   :  { %784 = vmatpush3.bf16.msra.mxu0 %v783_v5  ;;  %808 = vmatpush3.bf16.msra.mxu1 %v783_v5  ;;  %v792_v15 = vpack.c.bf16 %v93_v11, %v92_v10  ;;  %v96_v16 = vld [vmem:[#allocation5 + $0x50] sm:$0xff]  ;;  %v97_v17 = vld [vmem:[#allocation5 + $0x58] sm:$0xff]  ;;  %v795_v18 = vpack.c.bf16 %v95_v14, %v94_v13  ;;  %v98_v19 = vld [vmem:[#allocation5 + $0x60] sm:$0xff]  ;;  %v284_v13 = vlaneseq  ;;  %p978_p4 = scmp.ne.s32.totalorder %s611_s14, %s977_s17  ;;  %p983_p6 = scmp.lt.s32.totalorder %s977_s17, %s977_s17 }
  0x4f   :  { %785 = vmatprep.subr.bf16.mxu0 %v1015_v0  ;;  %809 = vmatprep.subr.bf16.mxu1 %v1015_v0  ;;  %v99_v20 = vld [vmem:[#allocation5 + $0x68] sm:$0xff]  ;;  %v798_v21 = vpack.c.bf16 %v97_v17, %v96_v16  ;;  %v100_v23 = vld [vmem:[#allocation5 + $0x70] sm:$0xff]  ;;  %v101_v24 = vld [vmem:[#allocation5 + $0x78] sm:$0xff] }
  0x50   :  { %v801_v22 = vpack.c.bf16 %v99_v20, %v98_v19  ;;  %v804_v25 = vpack.c.bf16 %v101_v24, %v100_v23  ;;  %v84_v26 = vld [vmem:[#allocation2] sm:$0x3]  ;;  %v843_v28 = vld [vmem:[#allocation7] ss:$8 sps:$4 sm:$0xff]   ;;  %v845_v29 = vld [vmem:[#allocation7 + $0x4] ss:$8 sps:$4 sm:$0xff]   ;;  %p984_p7 = por %p983_p6, %p982_p5 }
  0x51   :  { %v85_v27 = vunpack.c.l.bf16 %v84_v26  ;;  %v848_v30 = vld [vmem:[#allocation7 + $0x14] ss:$8 sps:$4 sm:$0xff]   ;;  %v846_v31 = vld [vmem:[#allocation7 + $0x10] ss:$8 sps:$4 sm:$0xff]   ;;  %v851_v37 = vld [vmem:[#allocation7 + $0x24] ss:$8 sps:$4 sm:$0xff]  }
  0x52   :  { %787 = vmatpush3.bf16.msra.mxu0 %v786_v7  ;;  %811 = vmatpush3.bf16.msra.mxu1 %v786_v7  ;;  %v849_v38 = vld [vmem:[#allocation7 + $0x20] ss:$8 sps:$4 sm:$0xff]   ;;  %v854_v39 = vld [vmem:[#allocation7 + $0x34] ss:$8 sps:$4 sm:$0xff]   ;;  %v852_v40 = vld [vmem:[#allocation7 + $0x30] ss:$8 sps:$4 sm:$0xff]   ;;  %p985_p8 = pnand %p984_p7, %p978_p4 }
  0x53   :  { %788 = vmatprep.subr.bf16.mxu0 %v1015_v0  ;;  %812 = vmatprep.subr.bf16.mxu1 %v1015_v0  ;;  %v855_v41 = vld [vmem:[#allocation7 + $0x40] ss:$8 sps:$4 sm:$0xff]   ;;  %v857_v42 = vld [vmem:[#allocation7 + $0x44] ss:$8 sps:$4 sm:$0xff]   ;;  %v860_v43 = vld [vmem:[#allocation7 + $0x54] ss:$8 sps:$4 sm:$0xff]  }
  0x54   :  { %v858_v45 = vld [vmem:[#allocation7 + $0x50] ss:$8 sps:$4 sm:$0xff]   ;;  %v863_v46 = vld [vmem:[#allocation7 + $0x64] ss:$8 sps:$4 sm:$0xff]   ;;  %v861_v47 = vld [vmem:[#allocation7 + $0x60] ss:$8 sps:$4 sm:$0xff]  }
  0x55   :  { %v866_v48 = vld [vmem:[#allocation7 + $0x74] ss:$8 sps:$4 sm:$0xff]   ;;  %v864_v49 = vld [vmem:[#allocation7 + $0x70] ss:$8 sps:$4 sm:$0xff]   ;;  %v867_v50 = vld [vmem:[#allocation8 + $0x40] sm:$0xff]   ;;  %v285_v14 = vshrl.u32 %v284_v13, 7 }
  0x56   :  { %790 = vmatpush3.bf16.msra.mxu0 %v789_v12  ;;  %814 = vmatpush3.bf16.msra.mxu1 %v789_v12  ;;  %v868_v51 = vld [vmem:[#allocation8] sm:$0xff]   ;;  %v869_v52 = vld [vmem:[#allocation8 + $0x48] sm:$0xff]   ;;  %v621_v59 = vld [vmem:[%s1145_s2] ss:$0 sm:$0xff] }
  0x57   :  { %791 = vmatprep.subr.bf16.mxu0 %v1015_v0  ;;  %815 = vmatprep.subr.bf16.mxu1 %v1015_v0  ;;  %v870_v53 = vld [vmem:[#allocation8 + $0x8] sm:$0xff]   ;;  %v622_v61 = vld [vmem:[%s1146_s3] ss:$0 sm:$0xff]  ;;  %v871_v1 = vld [vmem:[#allocation8 + $0x50] sm:$0xff]   ;;  %v290_v17 = vsub.s32 1, %v285_v14 }
  0x58   :  { %v872_v2 = vld [vmem:[#allocation8 + $0x10] sm:$0xff]   ;;  %v873_v3 = vld [vmem:[#allocation8 + $0x58] sm:$0xff]   ;;  %v875_v5 = vld [vmem:[#allocation8 + $0x60] sm:$0xff]  }
  0x59   :  { %v874_v4 = vld [vmem:[#allocation8 + $0x18] sm:$0xff]   ;;  %v876_v6 = vld [vmem:[#allocation8 + $0x20] sm:$0xff]   ;;  %v877_v7 = vld [vmem:[#allocation8 + $0x68] sm:$0xff]  }
  0x5a   :  { %793 = vmatpush3.bf16.msra.mxu0 %v792_v15  ;;  %817 = vmatpush3.bf16.msra.mxu1 %v792_v15  ;;  %v878_v8 = vld [vmem:[#allocation8 + $0x28] sm:$0xff]   ;;  %v879_v9 = vld [vmem:[#allocation8 + $0x70] sm:$0xff]   ;;  %v881_v11 = vld [vmem:[#allocation8 + $0x78] sm:$0xff]   ;;  %v286_v15 = vsub.s32 0, %v285_v14 }
  0x5b   :  { %794 = vmatprep.subr.bf16.mxu0 %v1015_v0  ;;  %818 = vmatprep.subr.bf16.mxu1 %v1015_v0  ;;  %v880_v10 = vld [vmem:[#allocation8 + $0x30] sm:$0xff]   ;;  %v882_v12 = vld [vmem:[#allocation8 + $0x38] sm:$0xff]  }
  0x5c   :  { %v282_v16 = vld [vmem:[%s1148_s5] sm:$0x3] }
  0x5d   :  { %v291_v19 = vrot.slane %v282_v16, %v290_v17 }
  0x5e   :  { %796 = vmatpush3.bf16.msra.mxu0 %v795_v18  ;;  %820 = vmatpush3.bf16.msra.mxu1 %v795_v18  ;;  %v287_v18 = vrot.slane %v282_v16, %v286_v15 }
  0x5f   :  { %797 = vmatprep.subr.bf16.mxu0 %v1015_v0  ;;  %821 = vmatprep.subr.bf16.mxu1 %v1015_v0 }
  0x62   :  { %799 = vmatpush3.bf16.msra.mxu0 %v798_v21  ;;  %823 = vmatpush3.bf16.msra.mxu1 %v798_v21 }
  0x63   :  { %800 = vmatprep.subr.bf16.mxu0 %v1015_v0  ;;  %824 = vmatprep.subr.bf16.mxu1 %v1015_v0 }
  0x66   :  { %802 = vmatpush3.bf16.msra.mxu0 %v801_v22  ;;  %826 = vmatpush3.bf16.msra.mxu1 %v801_v22 }
  0x67   :  { %803 = vmatprep.subr.bf16.mxu0 %v1015_v0  ;;  %827 = vmatprep.subr.bf16.mxu1 %v1015_v0 }
  0x6a   :  { %805 = vmatpush3.bf16.msra.mxu0 %v804_v25  ;;  %829 = vmatpush3.bf16.msra.mxu1 %v804_v25 }
  0x6b   :  { %374 = vmatprep.subr.bf16.mxu0 %v845_v29  ;;  %690 = vmatprep.subr.bf16.mxu1 %v867_v50 }
  0x6d   :  { %745 = vmatmul.mubr.f32.vlgmr.msra.gmra.mrb[0].mxu0 %v85_v27 }
  0x6e   :  { %375 = vmatpush1.bf16.msra.mxu0 %v843_v28  ;;  %406 = vmatprep.mubr.bf16.mxu0 %v1018_v44 }
  0x6f   :  { %376 = vmatprep.subr.bf16.mxu0 %v848_v30 }
  0x72   :  { %377 = vmatpush1.bf16.msra.mxu0 %v846_v31 }
  0x73   :  { %378 = vmatprep.subr.bf16.mxu0 %v851_v37 }
  0x76   :  { %379 = vmatpush1.bf16.msra.mxu0 %v849_v38 }
  0x77   :  { %380 = vmatprep.subr.bf16.mxu0 %v854_v39  ;;  %v639_v39 = vld [vmem:[%s1150_s7] ss:$0 sm:$0xff] }
  0x7a   :  { %381 = vmatpush1.bf16.msra.mxu0 %v852_v40 }
  0x7b   :  { %382 = vmatprep.subr.bf16.mxu0 %v857_v42 }
  0x7e   :  { %383 = vmatpush1.bf16.msra.mxu0 %v855_v41 }
  0x7f   :  { %384 = vmatprep.subr.bf16.mxu0 %v860_v43 }
  0x82   :  { %385 = vmatpush1.bf16.msra.mxu0 %v858_v45 }
  0x83   :  { %386 = vmatprep.subr.bf16.mxu0 %v863_v46 }
  0x86   :  { %387 = vmatpush1.bf16.msra.mxu0 %v861_v47 }
  0x87   :  { %388 = vmatprep.subr.bf16.mxu0 %v866_v48 }
  0x8a   :  { %389 = vmatpush1.bf16.msra.mxu0 %v864_v49 }
 0x140   :  { %v168_v32 = vpop.f32.mrb[0].mxu0 }
 0x141   :  { %v172_v33 = vmul.f32 0.03125, %v168_v32  ;;  %v746_v34 = vpop.f32.mrb[1].mxu0 }
 0x143   :  { %v173_v35 = vsub.f32 %v85_v27, %v172_v33 }
 0x145   :  { %v174_v36 = vmul.f32 %v173_v35, %v173_v35 }
 0x147   :  { %780 = vmatmul.mubr.f32.vlgmr.msra.gmra.mrb[0].mxu1 %v174_v36 }
 0x148   :  { %691 = vmatpush3.bf16.msra.mxu1 %v868_v51 }
 0x149   :  { %692 = vmatprep.subr.bf16.mxu1 %v869_v52 }
 0x14c   :  { %693 = vmatpush3.bf16.msra.mxu1 %v870_v53 }
 0x14d   :  { %694 = vmatprep.subr.bf16.mxu1 %v871_v1 }
 0x150   :  { %695 = vmatpush3.bf16.msra.mxu1 %v872_v2 }
 0x151   :  { %696 = vmatprep.subr.bf16.mxu1 %v873_v3 }
 0x154   :  { %697 = vmatpush3.bf16.msra.mxu1 %v874_v4 }
 0x155   :  { %698 = vmatprep.subr.bf16.mxu1 %v875_v5 }
 0x158   :  { %699 = vmatpush3.bf16.msra.mxu1 %v876_v6 }
 0x159   :  { %700 = vmatprep.subr.bf16.mxu1 %v877_v7 }
 0x15c   :  { %701 = vmatpush3.bf16.msra.mxu1 %v878_v8 }
 0x15d   :  { %702 = vmatprep.subr.bf16.mxu1 %v879_v9 }
 0x160   :  { %703 = vmatpush3.bf16.msra.mxu1 %v880_v10 }
 0x161   :  { %704 = vmatprep.subr.bf16.mxu1 %v881_v11 }
 0x164   :  { %705 = vmatpush3.bf16.msra.mxu1 %v882_v12 }
 0x21a   :  { %v241_v54 = vpop.f32.mrb[0].mxu1 }
 0x21b   :  { %v245_v55 = vmul.f32 0.03125, %v241_v54  ;;  %v781_v56 = vpop.f32.mrb[1].mxu1 }
 0x21d   :  { %v246_v57 = vadd.f32 1e-05, %v245_v55 }
 0x21f   :  { %883 = vrsqrt.f32 %v246_v57 }
 0x229   :  { %v884_v58 = vpop.eup %883 }
 0x22a   :  { %v248_v60 = vmul.f32 %v884_v58, %v173_v35 }
 0x22c   :  { %v256_v62 = vmul.f32 %v621_v59, %v248_v60 }
 0x22e   :  { %v264_v63 = vadd.f32 %v622_v61, %v256_v62 }
 0x230   :  { %v265_v0 = vpack.c.bf16 %v264_v63, %v264_v63 }
 0x232   :  { %407 = vmatmul.mubr.bf16.vlgmr.msra.gmra.mrb[4].mxu0 %v265_v0 }
 0x305   :  { %v408_v20 = vpop.f32.mrb[4].mxu0 }
 0x306   :  { %v409_v21 = vadd.f32 %v408_v20, %v287_v18  ;;  %v410_v22 = vpop.f32.mrb[5].mxu0 }
 0x307   :  { %v411_v23 = vadd.f32 %v410_v22, %v291_v19  ;;  %v412_v24 = vpop.f32.mrb[6].mxu0 }
 0x308   :  { %v417_v25 = vmul.f32 0.70710677, %v409_v21  ;;  %v413_v26 = vpop.f32.mrb[7].mxu0  ;;  %v415_v30 = vmul.f32 0.5, %v409_v21 }
 0x309   :  { %v418_v27 = vmul.f32 0.70710677, %v411_v23  ;;  %v416_v32 = vmul.f32 0.5, %v411_v23 }
 0x30a   :  { %885 = verf.f32 %v417_v25 }
 0x30b   :  { %887 = verf.f32 %v418_v27 }
 0x314   :  { %v886_v28 = vpop.eup %885 }
 0x315   :  { %v888_v29 = vpop.eup %887  ;;  %v421_v31 = vadd.f32 1.0, %v886_v28 }
 0x316   :  { %v422_v33 = vadd.f32 1.0, %v888_v29 }
 0x317   :  { %v423_v34 = vmul.f32 %v421_v31, %v415_v30 }
 0x318   :  { %v424_v35 = vmul.f32 %v422_v33, %v416_v32 }
 0x319   :  { %v425_v37 = vpack.c.bf16 %v423_v34, %v423_v34 }
 0x31a   :  { %v426_v36 = vpack.c.bf16 %v424_v35, %v424_v35 }
 0x31c   :  { %594 = vmatprep.mubr.bf16.mxu1 %v426_v36 }
 0x31d   :  { %595 = vmatmul.mubr.bf16.vlgmr.msra.gmra.mrb[4].mxu1 %v425_v37 }
 0x3f0   :  { %v706_v38 = vpop.f32.mrb[4].mxu1 }
 0x3f1   :  { %v707_v40 = vpop.f32.mrb[5].mxu1 }
 0x3f2   :  { %v708_v41 = vadd.f32 %v707_v40, %v706_v38  ;;  %v709_v42 = vpop.f32.mrb[6].mxu1 }
 0x3f3   :  { %v710_v43 = vpop.f32.mrb[7].mxu1 }
 0x3f4   :  { %v597_v44 = vadd.f32 %v708_v41, %v639_v39 }
 0x3f6   :  { %v602_v45 = vpack.c.bf16 %v597_v44, %v597_v44 }
 0x3f8   :  { %603 = vst [vmem:[#allocation10] sm:$0x3] %v602_v45 }
 0x3f9   :  { %988 = shalt.err (!%p985_p8)
}
 0x3fa   :  { %s989_s7 = scalar_lea.hbm %s1151_s8, 32 }
 0x3fb   :  { %p990_p9 = scmp.ne.s32.totalorder %s1151_s8, %s989_s7  ;;  %p993_p10 = scmp.lt.u32.totalorder %s989_s7, %s1151_s8 }
 0x3fd   :  { %p995_p11 = pnand %p993_p10, %p990_p9 }
 0x3ff   :  { %998 = shalt.err (!%p995_p11)
}
 0x400   :  { %613 = dma.vmem_to_hbm [thread:$0]  %s611_s14, 32, %s1151_s8, [#allocation4]  }
 0x401   :  { %1005 = dma.done.wait [#allocation4], 32  }
 0x402   :  { %1006 = vsyncadd [#allocation4], 4294967264 }
 0x403   :  { %617 = vsyncpa [#allocation3], 1 }
 0x404   :  { %618 = vsyncpa [#allocation6], 1 }
 0x405   :  { %619 = vsyncpa [#allocation9], 1 }
 0x406   :  { %620 = vsyncpa [#allocation4], 1 }

</bundles_post_ra>
